<compile_context>
chip_gen: v7x
topology: tpu7x:2x2x1
jax: 0.10.0
libtpu: 0.0.40
codegen_flags: <defaults>
</compile_context>

<pallas_src>
import jax
import jax.numpy as jnp
from jax.experimental import pallas as pl
from jax.experimental.pallas import tpu as pltpu

# ----- problem sizes (synthetic env) -----
GRID_SIZE = 4
STATE_SIZE = GRID_SIZE * GRID_SIZE      # env.grid_size ** 2 = 16
ACTION_SIZE = 4                         # env.action_size
TIMESTEP_SIZE = 8
BATCH_SIZE = 2

# Fold enough rows into the lane axis that the output minor dim is 128 lanes.
LANE_FOLD = 128 // ACTION_SIZE if 128 % ACTION_SIZE == 0 else 8   # = 32 here


def _actor_kernel_plain(x_ref, w_ref, o_ref):
    # x_ref: (tm, FOLD*S) f32, w_ref: (FOLD*S, FOLD*A) f32 block-diagonal, resident.
    o_ref[...] = jnp.dot(
        x_ref[...], w_ref[...], preferred_element_type=jnp.float32
    ).astype(o_ref.dtype)


def _actor_kernel_masked(x_ref, w_ref, keep_ref, o_ref):
    # keep_ref: (tm, FOLD*A) bf16; 1.0 = keep, 0.0 = masked (single VALU multiply).
    logits = jnp.dot(x_ref[...], w_ref[...], preferred_element_type=jnp.float32)
    o_ref[...] = (logits * keep_ref[...].astype(jnp.float32)).astype(o_ref.dtype)


def fold_weight(weight, fold=LANE_FOLD):
    """weight: (ACTION_SIZE, STATE_SIZE) PyTorch Linear layout.

    Returns the block-diagonal folded weight kron(I_fold, W^T) of shape
    (fold*STATE_SIZE, fold*ACTION_SIZE).  Call ONCE at parameter-init time,
    not per forward call.
    """
    w_t = weight.astype(jnp.float32).T                      # (S, A)
    return jnp.kron(jnp.eye(fold, dtype=jnp.float32), w_t)  # (fold*S, fold*A)


# Folded-row tile candidates (multiples of 16 so bf16 mask tiles stay legal).
_TM_CANDIDATES = (2048, 1024, 512, 256, 128, 64, 32, 16)


def _pick_folded_tile(mf):
    # VMEM per folded row (double-buffered): x 512*4 B + out 128*4 B + keep 128*2 B
    # -> ~5.5 KiB/row.  tm=2048 ~= 11 MiB scratch + 256 KiB resident weight: under
    # the 32 MiB scoped-VMEM default on v7x, far under v5e/v6e's 128 MiB.
    if mf <= _TM_CANDIDATES[-1]:
        return mf                       # single full-extent block (tiny / demo M)
    for tm in _TM_CANDIDATES:
        if mf >= 2 * tm:                # >= 2 grid steps -> both v7x TCs get work
            return tm
    return _TM_CANDIDATES[-1]


def actor_net_forward(state, w_folded, mask=None, *, fold=LANE_FOLD):
    """
    state    : (T, B, STATE_SIZE) float32
    w_folded : (fold*STATE_SIZE, fold*ACTION_SIZE) float32, from fold_weight()
    mask     : optional (T, B) bool -- True positions are zeroed in the logits
    returns  : (T, B, ACTION_SIZE) float32
    """
    T, B, S = state.shape
    KF, NF = w_folded.shape
    assert KF == fold * S, "w_folded does not match fold * STATE_SIZE"
    A = NF // fold
    M = T * B

    x = state.reshape(M, S).astype(jnp.float32)

    mf_raw = pl.cdiv(M, fold)
    tm = _pick_folded_tile(mf_raw)
    mf = pl.cdiv(mf_raw, tm) * tm       # pad folded rows up to a tile multiple
    m_pad = mf * fold
    if m_pad != M:
        x = jnp.pad(x, ((0, m_pad - M), (0, 0)))
    xf = x.reshape(mf, KF)              # free row-major fold of rows into lanes

    grid = (mf // tm,)
    x_spec = pl.BlockSpec((tm, KF), lambda i: (i, 0))
    w_spec = pl.BlockSpec((KF, NF), lambda i: (0, 0))   # resident across the grid
    o_spec = pl.BlockSpec((tm, NF), lambda i: (i, 0))
    cparams = pltpu.CompilerParams(dimension_semantics=("parallel",))

    if mask is None:
        cost = pl.CostEstimate(
            flops=2 * mf * KF * NF,
            transcendentals=0,
            bytes_accessed=(xf.size + w_folded.size + mf * NF) * 4,
        )
        out = pl.pallas_call(
            _actor_kernel_plain,
            out_shape=jax.ShapeDtypeStruct((mf, NF), jnp.float32),
            grid=grid,
            in_specs=[x_spec, w_spec],
            out_specs=o_spec,
            compiler_params=cparams,
            cost_estimate=cost,
        )(xf, w_folded)
    else:
        keep = 1.0 - mask.reshape(M).astype(jnp.float32)   # 1 = keep, 0 = masked
        keep = jnp.broadcast_to(keep[:, None], (M, A))
        if m_pad != M:
            keep = jnp.pad(keep, ((0, m_pad - M), (0, 0)))
        keepf = keep.reshape(mf, NF).astype(jnp.bfloat16)  # lane-folded, half bytes
        k_spec = pl.BlockSpec((tm, NF), lambda i: (i, 0))
        cost = pl.CostEstimate(
            flops=2 * mf * KF * NF + mf * NF,
            transcendentals=0,
            bytes_accessed=(xf.size + w_folded.size + mf * NF) * 4 + keepf.size * 2,
        )
        out = pl.pallas_call(
            _actor_kernel_masked,
            out_shape=jax.ShapeDtypeStruct((mf, NF), jnp.float32),
            grid=grid,
            in_specs=[x_spec, w_spec, k_spec],
            out_specs=o_spec,
            compiler_params=cparams,
            cost_estimate=cost,
        )(xf, w_folded, keepf)

    # Free views back to (M, A); drop padded tail rows.
    return out.reshape(m_pad, A)[:M].reshape(T, B, A)


if __name__ == "__main__":
    key = jax.random.PRNGKey(0)
    k_state, k_w, k_mask = jax.random.split(key, 3)

    # deterministic "parameter init" matching nn.Linear's U(-1/sqrt(in), 1/sqrt(in))
    bound = 1.0 / (STATE_SIZE ** 0.5)
    weight = jax.random.uniform(
        k_w, (ACTION_SIZE, STATE_SIZE), minval=-bound, maxval=bound,
        dtype=jnp.float32,
    )
    w_folded = fold_weight(weight)      # built once, outside the forward path

    state = jax.random.normal(
        k_state, (TIMESTEP_SIZE, BATCH_SIZE, STATE_SIZE), dtype=jnp.float32
    )
    mask = jax.random.bernoulli(k_mask, 0.3, (TIMESTEP_SIZE, BATCH_SIZE))

    # run kernel (specialized masked / no-mask variants)
    logits_masked = actor_net_forward(state, w_folded, mask)
    logits_plain = actor_net_forward(state, w_folded, None)
    jax.block_until_ready(logits_masked)
    jax.block_until_ready(logits_plain)

    # reference check in plain JAX
    ref = jnp.einsum("tbs,as->tba", state, weight)
    ref_masked = jnp.where(mask[..., None], 0.0, ref)
    assert jnp.allclose(logits_plain, ref, atol=1e-5), "no-mask path mismatch"
    assert jnp.allclose(logits_masked, ref_masked, atol=1e-5), "mask path mismatch"

    print("KERNEL_OK")
</pallas_src>

<mosaic_0001>
module attributes {stable_mosaic.version = 11 : i64} {
  func.func @_actor_kernel_masked(%arg0: i32, %arg1: memref<1x512xf32, #tpu.memory_space<vmem>>, %arg2: memref<512x128xf32, #tpu.memory_space<vmem>>, %arg3: memref<1x128xbf16, #tpu.memory_space<vmem>>, %arg4: memref<1x128xf32, #tpu.memory_space<vmem>>) attributes {dimension_semantics = [#tpu.dimension_semantics<parallel>], iteration_bounds = array<i64: 1>, scalar_prefetch = 0 : i64, scratch_operands = 0 : i64, tpu.core_type = #tpu.core_type<tc>, window_params = [{transform_indices = @transform_0, window_bounds = array<i64: 1, 512>}, {pipeline_mode = #tpu.pipeline_mode<synchronous>, transform_indices = @transform_1, window_bounds = array<i64: 512, 128>}, {transform_indices = @transform_2, window_bounds = array<i64: 1, 128>}, {transform_indices = @transform_3, window_bounds = array<i64: 1, 128>}]} {
    %c0 = arith.constant 0 : index
    %c0_0 = arith.constant 0 : index
    %0 = vector.load %arg1[%c0, %c0_0] : memref<1x512xf32, #tpu.memory_space<vmem>>, vector<1x512xf32>
    %c0_1 = arith.constant 0 : index
    %c0_2 = arith.constant 0 : index
    %1 = vector.load %arg2[%c0_1, %c0_2] : memref<512x128xf32, #tpu.memory_space<vmem>>, vector<512x128xf32>
    %cst = arith.constant dense<0.000000e+00> : vector<1x128xf32>
    %2 = tpu.matmul %0, %1, %cst {dimension_numbers = #tpu.dot_dimension_numbers<[1], [0], [0], [1], [0, 0, 1, 1], [], []>} : vector<1x512xf32>, vector<512x128xf32>, vector<1x128xf32> -> vector<1x128xf32>
    %c0_3 = arith.constant 0 : index
    %c0_4 = arith.constant 0 : index
    %3 = vector.load %arg3[%c0_3, %c0_4] : memref<1x128xbf16, #tpu.memory_space<vmem>>, vector<1x128xbf16>
    %4 = arith.extf %3 : vector<1x128xbf16> to vector<1x128xf32>
    %5 = arith.mulf %2, %4 : vector<1x128xf32>
    %c0_5 = arith.constant 0 : index
    %c0_6 = arith.constant 0 : index
    %6 = vector.load %arg4[%c0_5, %c0_6] : memref<1x128xf32, #tpu.memory_space<vmem>>, vector<1x128xf32>
    tpu.vector_store %arg4[%c0_5, %c0_6], %5 {strides = array<i32>} : memref<1x128xf32, #tpu.memory_space<vmem>>, vector<1x128xf32>,
    return
  }
  func.func @transform_0(%arg0: i32) -> (i32, i32) {
    %c0_i32 = arith.constant 0 : i32
    %c0_i32_0 = arith.constant 0 : i32
    return %arg0, %c0_i32 : i32, i32
  }
  func.func @transform_1(%arg0: i32) -> (i32, i32) {
    %c0_i32 = arith.constant 0 : i32
    %c0_i32_0 = arith.constant 0 : i32
    %c0_i32_1 = arith.constant 0 : i32
    return %c0_i32, %c0_i32_0 : i32, i32
  }
  func.func @transform_2(%arg0: i32) -> (i32, i32) {
    %c0_i32 = arith.constant 0 : i32
    %c0_i32_0 = arith.constant 0 : i32
    return %arg0, %c0_i32 : i32, i32
  }
  func.func @transform_3(%arg0: i32) -> (i32, i32) {
    %c0_i32 = arith.constant 0 : i32
    %c0_i32_0 = arith.constant 0 : i32
    return %arg0, %c0_i32 : i32, i32
  }
}

</mosaic_0001>

<bundles_post_ra>
// kernel: tpu_custom_call.1
= control target key start
LH: loop header
LB: loop body
LE: loop exit
PB: predicated region body
PF: predicated region fallthrough
CT: control target
= control target key end

     0   :  { %8 = vsyncpa [#allocation3], 0  ;;  %s575_s0 = inlined_call_operand.hbm [shape: f32[1,512], index: 0, kind: input, shape index: {}]   ;;  %s576_s1 = inlined_call_operand.hbm [shape: f32[512,128], index: 1, kind: input, shape index: {}]   ;;  %s577_s2 = inlined_call_operand.vmem [shape: bf16[1,128], index: 2, kind: input, shape index: {}]   ;;  %s578_s3 = inlined_call_operand.hbm [shape: f32[1,128], index: 3, kind: output, shape index: {}]  }
   0x1   :  { %9 = vsyncpa [#allocation6], 0 }
   0x2   :  { %10 = vsyncpa [#allocation4], 0  ;;  %s498_s12 = smov [#allocation2]   ;;  %s499_s14 = smov [#allocation5]  }
   0x3   :  { %s17_s13 = sshll.u32 %s498_s12, 4  ;;  %s26_s15 = sshll.u32 %s499_s14, 4  ;;  %s18_s13 = int_to_ptr.vmem [resolvable:$true] %s17_s13  ;;  %s523_s15 = int_to_ptr.vmem [resolvable:$true] %s26_s15 }
   0x4   :  { %s426_s18 = scalar_lea.hbm %s575_s0, 64 }
   0x5   :  { %p427_p0 = scmp.ne.s32.totalorder %s575_s0, %s426_s18  ;;  %p430_p1 = scmp.lt.u32.totalorder %s426_s18, %s575_s0 }
   0x7   :  { %p432_p2 = pnand %p430_p1, %p427_p0 }
   0x9   :  { %435 = shalt.err (!%p432_p2)
}
   0xa   :  { %s436_s23 = scalar_lea.vmem %s18_s13, 64  ;;  %p441_p4 = scmp.lt.s32.totalorder %s18_s13, %s18_s13 }
   0xb   :  { %p437_p3 = scmp.ne.s32.totalorder %s18_s13, %s436_s23  ;;  %p442_p5 = scmp.lt.s32.totalorder %s436_s23, %s436_s23 }
   0xd   :  { %p443_p6 = por %p442_p5, %p441_p4 }
   0xf   :  { %p444_p7 = pnand %p443_p6, %p437_p3 }
  0x11   :  { %447 = shalt.err (!%p444_p7)
}
  0x12   :  { %20 = dma.hbm_to_vmem [thread:$0]  %s575_s0, 64, %s18_s13, [#allocation3]  }
  0x13   :  { %s448_s28 = scalar_lea.hbm %s576_s1, 8192 }
  0x14   :  { %p449_p8 = scmp.ne.s32.totalorder %s576_s1, %s448_s28  ;;  %p452_p9 = scmp.lt.u32.totalorder %s448_s28, %s576_s1 }
  0x16   :  { %p454_p10 = pnand %p452_p9, %p449_p8 }
  0x18   :  { %457 = shalt.err (!%p454_p10)
}
  0x19   :  { %s458_s6 = scalar_lea.vmem %s523_s15, 8192  ;;  %p463_p12 = scmp.lt.s32.totalorder %s523_s15, %s523_s15 }
  0x1a   :  { %p459_p11 = scmp.ne.s32.totalorder %s523_s15, %s458_s6  ;;  %p464_p13 = scmp.lt.s32.totalorder %s458_s6, %s458_s6 }
  0x1c   :  { %p465_p0 = por %p464_p13, %p463_p12 }
  0x1e   :  { %p466_p1 = pnand %p465_p0, %p459_p11 }
  0x20   :  { %469 = shalt.err (!%p466_p1)
}
  0x21   :  { %s500_s0 = smov 128   ;;  %s501_s7 = smov 8  }
  0x22   :  { %32 = dma.hbm_to_vmem [thread:$0]  %s576_s1, 8192, %s523_s15, [#allocation6], %s500_s0, %s500_s0, %s501_s7  }
  0x23   :  { %492 = dma.done.wait [#allocation3], 64  }
  0x24   :  { %493 = vsyncadd [#allocation3], 4294967232 }
  0x25   :  { %494 = dma.done.wait [#allocation6], 8192  }
  0x26   :  { %495 = vsyncadd [#allocation6], 4294959104  ;;  %v58_v0 = vld [vmem:[#allocation5 + $0x80] sm:$0xff]  ;;  %v59_v1 = vld [vmem:[#allocation5 + $0x88] sm:$0xff]  ;;  %v107_v47 = vlaneseq  ;;  %s502_s11 = smov [#allocation7]  }
  0x27   :  { %v90_v2 = vld [vmem:[#allocation5 + $0x180] sm:$0xff]  ;;  %v357_v3 = vpack.c.bf16 %v59_v1, %v58_v0  ;;  %v91_v4 = vld [vmem:[#allocation5 + $0x188] sm:$0xff]  ;;  %v60_v11 = vld [vmem:[#allocation5 + $0x90] sm:$0xff]  ;;  %s277_s12 = sshll.u32 %s502_s11, 4  ;;  %s278_s12 = int_to_ptr.vmem [resolvable:$true] %s277_s12 }
  0x28   :  { %v42_v5 = vld [vmem:[#allocation5] sm:$0xff]  ;;  %v43_v6 = vld [vmem:[#allocation5 + $0x8] sm:$0xff]  ;;  %v389_v7 = vpack.c.bf16 %v91_v4, %v90_v2  ;;  %v61_v13 = vld [vmem:[#allocation5 + $0x98] sm:$0xff]  ;;  %v554_v61 = vshrl.u32 %v107_v47, 7  ;;  %s470_s13 = scalar_lea.vmem %s278_s12, 16  ;;  %s474_s14 = scalar_lea.vmem %s278_s12, 32 }
  0x29   :  { %v359_v8 = vpack.c.bf16 %v43_v6, %v42_v5  ;;  %v74_v9 = vld [vmem:[#allocation5 + $0x100] sm:$0xff]  ;;  %v75_v10 = vld [vmem:[#allocation5 + $0x108] sm:$0xff]  ;;  %358 = vmatprep.subr.bf16.mxu0 %v357_v3  ;;  %v92_v14 = vld [vmem:[#allocation5 + $0x190] sm:$0xff]  ;;  %v361_v16 = vpack.c.bf16 %v61_v13, %v60_v11  ;;  %p471_p2 = scmp.ne.s32.totalorder %s278_s12, %s470_s13  ;;  %p475_p3 = scmp.lt.s32.totalorder %s278_s12, %s278_s12 }
  0x2a   :  { %v391_v12 = vpack.c.bf16 %v75_v10, %v74_v9  ;;  %v93_v15 = vld [vmem:[#allocation5 + $0x198] sm:$0xff]  ;;  %390 = vmatprep.subr.bf16.mxu1 %v389_v7  ;;  %v44_v18 = vld [vmem:[#allocation5 + $0x10] sm:$0xff]  ;;  %v62_v23 = vld [vmem:[#allocation5 + $0xa0] sm:$0xff]  ;;  %v113_v10 = vsub.s32 1, %v554_v61  ;;  %v121_v11 = vsub.s32 3, %v554_v61  ;;  %p476_p4 = scmp.lt.s32.totalorder %s474_s14, %s470_s13 }
  0x2b   :  { %360 = vmatpush3.bf16.msra.mxu0 %v359_v8  ;;  %v393_v17 = vpack.c.bf16 %v93_v15, %v92_v14  ;;  %v45_v19 = vld [vmem:[#allocation5 + $0x18] sm:$0xff]  ;;  %v76_v20 = vld [vmem:[#allocation5 + $0x110] sm:$0xff]  ;;  %v63_v24 = vld [vmem:[#allocation5 + $0xa8] sm:$0xff] }
  0x2c   :  { %392 = vmatpush3.bf16.msra.mxu1 %v391_v12  ;;  %v363_v21 = vpack.c.bf16 %v45_v19, %v44_v18  ;;  %v77_v22 = vld [vmem:[#allocation5 + $0x118] sm:$0xff]  ;;  %362 = vmatprep.subr.bf16.mxu0 %v361_v16  ;;  %v365_v26 = vpack.c.bf16 %v63_v24, %v62_v23  ;;  %v94_v27 = vld [vmem:[#allocation5 + $0x1a0] sm:$0xff]  ;;  %v95_v28 = vld [vmem:[#allocation5 + $0x1a8] sm:$0xff]  ;;  %p477_p5 = por %p476_p4, %p475_p3 }
  0x2d   :  { %394 = vmatprep.subr.bf16.mxu1 %v393_v17  ;;  %v395_v25 = vpack.c.bf16 %v77_v22, %v76_v20  ;;  %v46_v29 = vld [vmem:[#allocation5 + $0x20] sm:$0xff]  ;;  %v397_v30 = vpack.c.bf16 %v95_v28, %v94_v27  ;;  %v47_v31 = vld [vmem:[#allocation5 + $0x28] sm:$0xff]  ;;  %v64_v35 = vld [vmem:[#allocation5 + $0xb0] sm:$0xff] }
  0x2e   :  { %v78_v32 = vld [vmem:[#allocation5 + $0x120] sm:$0xff]  ;;  %v79_v33 = vld [vmem:[#allocation5 + $0x128] sm:$0xff]  ;;  %v367_v34 = vpack.c.bf16 %v47_v31, %v46_v29  ;;  %v65_v36 = vld [vmem:[#allocation5 + $0xb8] sm:$0xff]  ;;  %p478_p6 = pnand %p477_p5, %p471_p2 }
  0x2f   :  { %364 = vmatpush3.bf16.msra.mxu0 %v363_v21  ;;  %v96_v37 = vld [vmem:[#allocation5 + $0x1b0] sm:$0xff]  ;;  %v399_v38 = vpack.c.bf16 %v79_v33, %v78_v32  ;;  %v369_v39 = vpack.c.bf16 %v65_v36, %v64_v35  ;;  %v97_v40 = vld [vmem:[#allocation5 + $0x1b8] sm:$0xff]  ;;  %v66_v46 = vld [vmem:[#allocation5 + $0xc0] sm:$0xff] }
  0x30   :  { %396 = vmatpush3.bf16.msra.mxu1 %v395_v25  ;;  %366 = vmatprep.subr.bf16.mxu0 %v365_v26  ;;  %v48_v41 = vld [vmem:[#allocation5 + $0x30] sm:$0xff]  ;;  %v49_v42 = vld [vmem:[#allocation5 + $0x38] sm:$0xff]  ;;  %v401_v43 = vpack.c.bf16 %v97_v40, %v96_v37  ;;  %v67_v48 = vld [vmem:[#allocation5 + $0xc8] sm:$0xff]  ;;  %v109_v37 = vsub.s32 0, %v554_v61 }
  0x31   :  { %398 = vmatprep.subr.bf16.mxu1 %v397_v30  ;;  %v80_v44 = vld [vmem:[#allocation5 + $0x130] sm:$0xff]  ;;  %v81_v45 = vld [vmem:[#allocation5 + $0x138] sm:$0xff]  ;;  %v98_v49 = vld [vmem:[#allocation5 + $0x1c0] sm:$0xff]  ;;  %v371_v51 = vpack.c.bf16 %v49_v42, %v48_v41  ;;  %v373_v53 = vpack.c.bf16 %v67_v48, %v66_v46 }
  0x32   :  { %v99_v50 = vld [vmem:[#allocation5 + $0x1c8] sm:$0xff]  ;;  %v403_v52 = vpack.c.bf16 %v81_v45, %v80_v44  ;;  %v50_v54 = vld [vmem:[#allocation5 + $0x40] sm:$0xff]  ;;  %v68_v59 = vld [vmem:[#allocation5 + $0xd0] sm:$0xff] }
  0x33   :  { %368 = vmatpush3.bf16.msra.mxu0 %v367_v34  ;;  %v51_v55 = vld [vmem:[#allocation5 + $0x48] sm:$0xff]  ;;  %v82_v56 = vld [vmem:[#allocation5 + $0x140] sm:$0xff]  ;;  %v405_v57 = vpack.c.bf16 %v99_v50, %v98_v49  ;;  %v69_v60 = vld [vmem:[#allocation5 + $0xd8] sm:$0xff] }
  0x34   :  { %400 = vmatpush3.bf16.msra.mxu1 %v399_v38  ;;  %370 = vmatprep.subr.bf16.mxu0 %v369_v39  ;;  %v83_v58 = vld [vmem:[#allocation5 + $0x148] sm:$0xff]  ;;  %v100_v62 = vld [vmem:[#allocation5 + $0x1d0] sm:$0xff]  ;;  %v101_v63 = vld [vmem:[#allocation5 + $0x1d8] sm:$0xff]  ;;  %v375_v0 = vpack.c.bf16 %v51_v55, %v50_v54  ;;  %v377_v2 = vpack.c.bf16 %v69_v60, %v68_v59  ;;  %v117_v39 = vsub.s32 2, %v554_v61 }
  0x35   :  { %402 = vmatprep.subr.bf16.mxu1 %v401_v43  ;;  %v407_v1 = vpack.c.bf16 %v83_v58, %v82_v56  ;;  %v52_v3 = vld [vmem:[#allocation5 + $0x50] sm:$0xff]  ;;  %v53_v4 = vld [vmem:[#allocation5 + $0x58] sm:$0xff]  ;;  %v409_v6 = vpack.c.bf16 %v101_v63, %v100_v62  ;;  %v70_v8 = vld [vmem:[#allocation5 + $0xe0] sm:$0xff] }
  0x36   :  { %v84_v5 = vld [vmem:[#allocation5 + $0x150] sm:$0xff]  ;;  %v85_v7 = vld [vmem:[#allocation5 + $0x158] sm:$0xff]  ;;  %v71_v9 = vld [vmem:[#allocation5 + $0xe8] sm:$0xff]  ;;  %v379_v14 = vpack.c.bf16 %v53_v4, %v52_v3 }
  0x37   :  { %372 = vmatpush3.bf16.msra.mxu0 %v371_v51  ;;  %v102_v12 = vld [vmem:[#allocation5 + $0x1e0] sm:$0xff]  ;;  %v103_v13 = vld [vmem:[#allocation5 + $0x1e8] sm:$0xff]  ;;  %v411_v16 = vpack.c.bf16 %v85_v7, %v84_v5  ;;  %v381_v17 = vpack.c.bf16 %v71_v9, %v70_v8  ;;  %v41_v20 = vld [vmem:[#allocation2] sm:$0xf] }
  0x38   :  { %404 = vmatpush3.bf16.msra.mxu1 %v403_v52  ;;  %374 = vmatprep.subr.bf16.mxu0 %v373_v53  ;;  %v54_v15 = vld [vmem:[#allocation5 + $0x60] sm:$0xff]  ;;  %v55_v18 = vld [vmem:[#allocation5 + $0x68] sm:$0xff]  ;;  %v413_v21 = vpack.c.bf16 %v103_v13, %v102_v12  ;;  %v72_v23 = vld [vmem:[#allocation5 + $0xf0] sm:$0xff]  ;;  %v114_v25 = vrot.slane %v41_v20, %v113_v10  ;;  %v122_v26 = vrot.slane %v41_v20, %v121_v11 }
  0x39   :  { %406 = vmatprep.subr.bf16.mxu1 %v405_v57  ;;  %v86_v19 = vld [vmem:[#allocation5 + $0x160] sm:$0xff]  ;;  %v87_v22 = vld [vmem:[#allocation5 + $0x168] sm:$0xff]  ;;  %v73_v24 = vld [vmem:[#allocation5 + $0xf8] sm:$0xff]  ;;  %v383_v29 = vpack.c.bf16 %v55_v18, %v54_v15  ;;  %v110_v41 = vrot.slane %v41_v20, %v109_v37  ;;  %v118_v42 = vrot.slane %v41_v20, %v117_v39 }
  0x3a   :  { %v104_v27 = vld [vmem:[#allocation5 + $0x1f0] sm:$0xff]  ;;  %v105_v28 = vld [vmem:[#allocation5 + $0x1f8] sm:$0xff]  ;;  %191 = vmatprep.mubr.f32.mxu0 %v114_v25  ;;  %v415_v30 = vpack.c.bf16 %v87_v22, %v86_v19  ;;  %v385_v31 = vpack.c.bf16 %v73_v24, %v72_v23  ;;  %261 = vmatprep.mubr.f32.mxu1 %v122_v26 }
  0x3b   :  { %376 = vmatpush3.bf16.msra.mxu0 %v375_v0  ;;  %v56_v32 = vld [vmem:[#allocation5 + $0x70] sm:$0xff]  ;;  %v57_v33 = vld [vmem:[#allocation5 + $0x78] sm:$0xff]  ;;  %v417_v34 = vpack.c.bf16 %v105_v28, %v104_v27 }
  0x3c   :  { %408 = vmatpush3.bf16.msra.mxu1 %v407_v1  ;;  %378 = vmatprep.subr.bf16.mxu0 %v377_v2  ;;  %v88_v35 = vld [vmem:[#allocation5 + $0x170] sm:$0xff]  ;;  %v89_v36 = vld [vmem:[#allocation5 + $0x178] sm:$0xff]  ;;  %v387_v38 = vpack.c.bf16 %v57_v33, %v56_v32 }
  0x3d   :  { %410 = vmatprep.subr.bf16.mxu1 %v409_v6  ;;  %v419_v40 = vpack.c.bf16 %v89_v36, %v88_v35  ;;  %v267_v44 = vld [vmem:[%s577_s2] sm:$0x1] }
  0x3e   :  { %v268_v50 = vunpack.c.l.bf16 %v267_v44 }
  0x3f   :  { %380 = vmatpush3.bf16.msra.mxu0 %v379_v14 }
  0x40   :  { %412 = vmatpush3.bf16.msra.mxu1 %v411_v16  ;;  %382 = vmatprep.subr.bf16.mxu0 %v381_v17 }
  0x41   :  { %414 = vmatprep.subr.bf16.mxu1 %v413_v21 }
  0x43   :  { %384 = vmatpush3.bf16.msra.mxu0 %v383_v29 }
  0x44   :  { %416 = vmatpush3.bf16.msra.mxu1 %v415_v30  ;;  %386 = vmatprep.subr.bf16.mxu0 %v385_v31 }
  0x45   :  { %418 = vmatprep.subr.bf16.mxu1 %v417_v34 }
  0x47   :  { %388 = vmatpush3.bf16.msra.mxu0 %v387_v38 }
  0x48   :  { %420 = vmatpush3.bf16.msra.mxu1 %v419_v40 }
  0x4a   :  { %192 = vmatmul.mubr.f32.vlgmr.msra.gmra.mrb[0].mxu0 %v110_v41 }
  0x4b   :  { %262 = vmatmul.mubr.f32.vlgmr.msra.gmra.mrb[0].mxu1 %v118_v42 }
 0x11d   :  { %v319_v43 = vpop.f32.mrb[0].mxu0 }
 0x11e   :  { %v354_v45 = vpop.f32.mrb[0].mxu1  ;;  %v320_v46 = vpop.f32.mrb[1].mxu0 }
 0x11f   :  { %v321_v47 = vadd.f32 %v320_v46, %v319_v43  ;;  %v355_v48 = vpop.f32.mrb[1].mxu1 }
 0x120   :  { %v356_v49 = vadd.f32 %v355_v48, %v354_v45 }
 0x122   :  { %v264_v51 = vadd.f32 %v356_v49, %v321_v47 }
 0x124   :  { %v269_v52 = vmul.f32 %v268_v50, %v264_v51 }
 0x126   :  { %270 = vst [vmem:[#allocation7] sm:$0x1] %v269_v52 }
 0x127   :  { %481 = shalt.err (!%p478_p6)
}
 0x128   :  { %s482_s16 = scalar_lea.hbm %s578_s3, 16 }
 0x129   :  { %p483_p7 = scmp.ne.s32.totalorder %s578_s3, %s482_s16  ;;  %p486_p8 = scmp.lt.u32.totalorder %s482_s16, %s578_s3 }
 0x12b   :  { %p488_p9 = pnand %p486_p8, %p483_p7 }
 0x12d   :  { %491 = shalt.err (!%p488_p9)
}
 0x12e   :  { %280 = dma.vmem_to_hbm [thread:$0]  %s278_s12, 16, %s578_s3, [#allocation4]  }
 0x12f   :  { %496 = dma.done.wait [#allocation4], 16  }
 0x130   :  { %497 = vsyncadd [#allocation4], 4294967280 }
 0x131   :  { %284 = vsyncpa [#allocation3], 1 }
 0x132   :  { %285 = vsyncpa [#allocation6], 1 }
 0x133   :  { %286 = vsyncpa [#allocation4], 1 }

</bundles_post_ra>
